<compile_context>
chip_gen: v6e
topology: v6e:2x2x1
jax: 0.10.0
libtpu: 0.0.40
codegen_flags: <defaults>
</compile_context>

<pallas_src>
import numpy as np
import jax
import jax.numpy as jnp
from jax.experimental import pallas as pl
from jax.experimental.pallas import tpu as pltpu


def _round_up(x, m):
    return ((x + m - 1) // m) * m


# VMEM sizing: budget for tiles/resident buffers, and the explicit scoped
# limit handed to Mosaic.  48 MiB is below v7x's 64 MiB physical VMEM and well
# below v5e/v6e's 128 MiB.
_VMEM_TILE_BUDGET = 40 << 20
_VMEM_LIMIT_BYTES = 48 << 20

# Cache of (seg, inv_len) device arrays keyed on the (static) packing layout,
# so repeated forward calls don't rebuild/upload the segment matrix.
_SEG_CACHE = {}


def fc_kernel(seg_ref, data_ref, inv_len_ref, wt_ref, out_ref, acc_ref):
    """Grid axis 0 walks tiles of the packed-time dimension (reduction).

    seg_ref:     (B_pad, tT)  exact 0/1 membership matrix tile
    data_ref:    (tT, E)      packed token tile (streaming input)
    inv_len_ref: (B_pad, 1)   f32 1/length per sequence (resident)
    wt_ref:      (E, E)       W^T (resident across the grid)
    out_ref:     (B_pad, E)   output, resident across the grid
    acc_ref:     (B_pad, E)   f32 accumulator of the per-sequence SUM of x
    """
    k = pl.program_id(0)

    @pl.when(k == 0)
    def _init():
        acc_ref[...] = jnp.zeros_like(acc_ref)

    # Segment-sum accumulation: (B_pad, tT) @ (tT, E) on the MXU, f32 acc.
    acc_ref[...] += jnp.dot(seg_ref[...], data_ref[...],
                            preferred_element_type=jnp.float32)

    @pl.when(k == pl.num_programs(0) - 1)
    def _finalize():
        # f32 per-row scale (VPU broadcast multiply) -> exact mean, then one
        # small projection: (B_pad, E) @ (E, E).  For large E this projection
        # (and resident W^T) would be hoisted out of the kernel; at E<=1024 it
        # is negligible VMEM and keeps the whole forward in one kernel.
        mean = (acc_ref[...] * inv_len_ref[...]).astype(wt_ref.dtype)
        out_ref[...] = jnp.dot(
            mean, wt_ref[...], preferred_element_type=jnp.float32
        ).astype(out_ref.dtype)


def _build_seg(batch_sizes_tuple, B_pad, T_pad, seg_dtype):
    """Cached 0/1 segment matrix + f32 1/length column (device arrays)."""
    key = (batch_sizes_tuple, B_pad, T_pad, np.dtype(seg_dtype).name)
    hit = _SEG_CACHE.get(key)
    if hit is not None:
        return hit

    B = int(batch_sizes_tuple[0])
    lengths = np.zeros((B_pad,), dtype=np.float64)
    seg = np.zeros((B_pad, T_pad), dtype=np.float32)
    total = 0
    for bs in batch_sizes_tuple:
        bs = int(bs)
        rows = np.arange(bs)
        seg[rows, total + rows] = 1.0            # exact in bf16/fp8 too
        lengths[:bs] += 1.0
        total += bs
    inv_len = np.zeros((B_pad, 1), dtype=np.float32)
    inv_len[:B, 0] = 1.0 / lengths[:B]

    seg_j = jnp.asarray(seg).astype(seg_dtype)
    inv_j = jnp.asarray(inv_len)
    _SEG_CACHE[key] = (seg_j, inv_j)
    return seg_j, inv_j


def fc_forward(data, W, batch_sizes, *, matmul_dtype=jnp.bfloat16, tile_t=2048):
    """Pallas equivalent of FC(dropout=0, linearity=None, bias=False).forward.

    data:        (T_total, E) packed tokens (PackedSequence.data)
    W:           (E, E) nn.Linear weight (out_features, in_features)
    batch_sizes: 1-D int array (static host metadata, like PackedSequence)
    Returns (retval, None), retval shape (batch_size, E) float32.
    """
    batch_sizes = np.asarray(batch_sizes, dtype=np.int64)
    assert np.all(batch_sizes[:-1] >= batch_sizes[1:]), (
        "batch_sizes must be non-increasing (valid PackedSequence)")
    T, E = data.shape
    B = int(batch_sizes[0])
    assert int(batch_sizes.sum()) == T, "sum(batch_sizes) must equal packed rows"

    cdt = np.dtype(matmul_dtype)
    itemsize = cdt.itemsize

    # Sub-32-bit dtypes pack rows along sublanes: pad B to 8 (f32) / 16 (bf16)
    # / 32 (fp8) so seg/acc vregs are fully packed and stores are unmasked.
    sublane_pack = 8 * max(1, 4 // itemsize)
    B_pad = _round_up(B, sublane_pack)

    # T tile: as large as requested (default 2048 rows ~ 0.5-4 MiB per block),
    # 128-aligned, then shrunk so the double-buffered working set respects the
    # VMEM budget (v7x-safe).
    tT = _round_up(min(int(tile_t), _round_up(T, 128)), 128)

    def _vmem_need(t):
        stream = 2 * (t * E + B_pad * t) * itemsize        # data + seg, x2 buffers
        resident = 2 * E * E * itemsize + B_pad * E * 4    # W^T buffers + f32 acc
        small = 2 * (B_pad * 4) + 2 * (B_pad * E * 4)      # inv_len + out buffers
        return stream + resident + small

    while tT > 128 and _vmem_need(tT) > _VMEM_TILE_BUDGET:
        tT -= 128

    T_pad = _round_up(T, tT)
    grid_t = T_pad // tT

    seg_j, inv_len_j = _build_seg(tuple(int(b) for b in batch_sizes),
                                  B_pad, T_pad, cdt)

    # Cast (and pad only if needed) the streaming input.  Ideally `data`
    # arrives already in the streaming dtype / padded from upstream; this is
    # the only extra pass over it.
    data_j = jnp.asarray(data)
    if data_j.dtype != cdt:
        data_j = data_j.astype(cdt)
    if T_pad != T:
        data_j = jnp.pad(data_j, ((0, T_pad - T), (0, 0)))

    wt = jnp.asarray(W).T.astype(cdt)            # (E_in, E_out): mean @ W^T

    cost = pl.CostEstimate(
        flops=2 * B_pad * T_pad * E + 2 * B_pad * E * E,
        transcendentals=0,
        bytes_accessed=(T_pad * E + B_pad * T_pad + E * E) * itemsize
        + B_pad * E * 4 + B_pad * 4,
    )

    out_full = pl.pallas_call(
        fc_kernel,
        out_shape=jax.ShapeDtypeStruct((B_pad, E), jnp.float32),
        grid_spec=pltpu.PrefetchScalarGridSpec(
            num_scalar_prefetch=0,
            grid=(grid_t,),
            in_specs=[
                pl.BlockSpec((B_pad, tT), lambda k: (0, k)),   # seg tile
                pl.BlockSpec((tT, E), lambda k: (k, 0)),       # data tile (stream)
                pl.BlockSpec((B_pad, 1), lambda k: (0, 0)),    # 1/length, resident
                pl.BlockSpec((E, E), lambda k: (0, 0)),        # W^T, resident
            ],
            out_specs=pl.BlockSpec((B_pad, E), lambda k: (0, 0)),
            scratch_shapes=[pltpu.VMEM((B_pad, E), jnp.float32)],
        ),
        compiler_params=pltpu.CompilerParams(
            dimension_semantics=("arbitrary",),
            vmem_limit_bytes=_VMEM_LIMIT_BYTES),
        cost_estimate=cost,
    )(seg_j, data_j, inv_len_j, wt)

    return out_full[:B], None


if __name__ == "__main__":
    # Small shapes consistent with the module: E = word_embed_size, a packed
    # batch of 4 sequences with lengths [5, 5, 3, 3].
    E = 128
    batch_sizes = np.array([4, 4, 4, 2, 2], dtype=np.int64)  # B=4, T_total=16
    T = int(batch_sizes.sum())
    B = int(batch_sizes[0])

    key = jax.random.PRNGKey(0)
    kd, kw = jax.random.split(key)
    data = jax.random.normal(kd, (T, E), dtype=jnp.float32)
    bound = 1.0 / float(np.sqrt(E))
    W = jax.random.uniform(kw, (E, E), dtype=jnp.float32,
                           minval=-bound, maxval=bound)

    # Pure-NumPy reference reproducing the PyTorch loop exactly.
    y = np.asarray(data) @ np.asarray(W).T
    ref = np.zeros((B, E), dtype=np.float32)
    lens = np.zeros((B,), dtype=np.float32)
    total = 0
    for bs in batch_sizes:
        bs = int(bs)
        ref[:bs] += y[total:total + bs]
        lens[:bs] += 1.0
        total += bs
    ref = ref / lens[:, None]

    # f32 verification path: tight tolerance (reassociation only changes the
    # FP summation order).
    out_f32, none_slot = fc_forward(data, W, batch_sizes,
                                    matmul_dtype=jnp.float32)
    out_f32 = jax.block_until_ready(out_f32)
    assert none_slot is None
    assert out_f32.shape == (B, E)
    np.testing.assert_allclose(np.asarray(out_f32), ref, rtol=1e-5, atol=1e-5)

    # Default bf16 streaming path (memory-bound win on all generations); seg
    # is exact 0/1 and 1/length is applied in f32, so only data/W rounding
    # remains.
    out_bf16, _ = fc_forward(data, W, batch_sizes)
    out_bf16 = jax.block_until_ready(out_bf16)
    np.testing.assert_allclose(np.asarray(out_bf16), ref, rtol=2e-2, atol=2e-2)

    # Second call exercises the cached segment-matrix path (no host rebuild).
    out_again, _ = fc_forward(data, W, batch_sizes)
    jax.block_until_ready(out_again)

    print("KERNEL_OK")
</pallas_src>

<mosaic_0001>
module attributes {stable_mosaic.version = 11 : i64} {
  func.func @fc_kernel(%arg0: i32, %arg1: memref<8x128xf32, #tpu.memory_space<vmem>>, %arg2: memref<128x128xf32, #tpu.memory_space<vmem>>, %arg3: memref<8x1xf32, #tpu.memory_space<vmem>>, %arg4: memref<128x128xf32, #tpu.memory_space<vmem>>, %arg5: memref<8x128xf32, #tpu.memory_space<vmem>>, %arg6: memref<8x128xf32, #tpu.memory_space<vmem>>) attributes {dimension_semantics = [#tpu.dimension_semantics<arbitrary>], iteration_bounds = array<i64: 1>, scalar_prefetch = 0 : i64, scratch_operands = 1 : i64, tpu.core_type = #tpu.core_type<tc>, window_params = [{transform_indices = @transform_0, window_bounds = array<i64: 8, 128>}, {transform_indices = @transform_1, window_bounds = array<i64: 128, 128>}, {pipeline_mode = #tpu.pipeline_mode<synchronous>, transform_indices = @transform_2, window_bounds = array<i64: 8, 1>}, {pipeline_mode = #tpu.pipeline_mode<synchronous>, transform_indices = @transform_3, window_bounds = array<i64: 128, 128>}, {pipeline_mode = #tpu.pipeline_mode<synchronous>, transform_indices = @transform_4, window_bounds = array<i64: 8, 128>}]} {
    %c0_i32 = arith.constant 0 : i32
    %0 = arith.cmpi eq, %arg0, %c0_i32 : i32
    %1 = arith.extui %0 : i1 to i32
    %c0_i32_0 = arith.constant 0 : i32
    %2 = arith.cmpi ne, %1, %c0_i32_0 : i32
    scf.if %2 {
      %cst_10 = arith.constant 0.000000e+00 : f32
      %12 = vector.broadcast %cst_10 : f32 to vector<8x128xf32>
      %c0_11 = arith.constant 0 : index
      %c0_12 = arith.constant 0 : index
      %13 = vector.load %arg6[%c0_11, %c0_12] : memref<8x128xf32, #tpu.memory_space<vmem>>, vector<8x128xf32>
      tpu.vector_store %arg6[%c0_11, %c0_12], %12 {strides = array<i32>} : memref<8x128xf32, #tpu.memory_space<vmem>>, vector<8x128xf32>,
    } else {
    }
    %c0 = arith.constant 0 : index
    %c0_1 = arith.constant 0 : index
    %3 = vector.load %arg6[%c0, %c0_1] : memref<8x128xf32, #tpu.memory_space<vmem>>, vector<8x128xf32>
    %c0_2 = arith.constant 0 : index
    %c0_3 = arith.constant 0 : index
    %4 = vector.load %arg1[%c0_2, %c0_3] : memref<8x128xf32, #tpu.memory_space<vmem>>, vector<8x128xf32>
    %c0_4 = arith.constant 0 : index
    %c0_5 = arith.constant 0 : index
    %5 = vector.load %arg2[%c0_4, %c0_5] : memref<128x128xf32, #tpu.memory_space<vmem>>, vector<128x128xf32>
    %cst = arith.constant dense<0.000000e+00> : vector<8x128xf32>
    %6 = tpu.matmul %4, %5, %cst {dimension_numbers = #tpu.dot_dimension_numbers<[1], [0], [0], [1], [0, 0, 1, 1], [], []>} : vector<8x128xf32>, vector<128x128xf32>, vector<8x128xf32> -> vector<8x128xf32>
    %7 = arith.addf %3, %6 : vector<8x128xf32>
    %c0_6 = arith.constant 0 : index
    %c0_7 = arith.constant 0 : index
    %8 = vector.load %arg6[%c0_6, %c0_7] : memref<8x128xf32, #tpu.memory_space<vmem>>, vector<8x128xf32>
    tpu.vector_store %arg6[%c0_6, %c0_7], %7 {strides = array<i32>} : memref<8x128xf32, #tpu.memory_space<vmem>>, vector<8x128xf32>,
    %c0_i32_8 = arith.constant 0 : i32
    %9 = arith.cmpi eq, %arg0, %c0_i32_8 : i32
    %10 = arith.extui %9 : i1 to i32
    %c0_i32_9 = arith.constant 0 : i32
    %11 = arith.cmpi ne, %10, %c0_i32_9 : i32
    scf.if %11 {
      %c0_10 = arith.constant 0 : index
      %c0_11 = arith.constant 0 : index
      %12 = vector.load %arg6[%c0_10, %c0_11] : memref<8x128xf32, #tpu.memory_space<vmem>>, vector<8x128xf32>
      %c0_12 = arith.constant 0 : index
      %c0_13 = arith.constant 0 : index
      %13 = vector.load %arg3[%c0_12, %c0_13] : memref<8x1xf32, #tpu.memory_space<vmem>>, vector<8x1xf32>
      %14 = vector.broadcast %13 : vector<8x1xf32> to vector<8x128xf32>
      %15 = arith.mulf %12, %14 : vector<8x128xf32>
      %c0_14 = arith.constant 0 : index
      %c0_15 = arith.constant 0 : index
      %16 = vector.load %arg4[%c0_14, %c0_15] : memref<128x128xf32, #tpu.memory_space<vmem>>, vector<128x128xf32>
      %cst_16 = arith.constant dense<0.000000e+00> : vector<8x128xf32>
      %17 = tpu.matmul %15, %16, %cst_16 {dimension_numbers = #tpu.dot_dimension_numbers<[1], [0], [0], [1], [0, 0, 1, 1], [], []>} : vector<8x128xf32>, vector<128x128xf32>, vector<8x128xf32> -> vector<8x128xf32>
      %c0_17 = arith.constant 0 : index
      %c0_18 = arith.constant 0 : index
      %18 = vector.load %arg5[%c0_17, %c0_18] : memref<8x128xf32, #tpu.memory_space<vmem>>, vector<8x128xf32>
      tpu.vector_store %arg5[%c0_17, %c0_18], %17 {strides = array<i32>} : memref<8x128xf32, #tpu.memory_space<vmem>>, vector<8x128xf32>,
    } else {
    }
    return
  }
  func.func @transform_0(%arg0: i32) -> (i32, i32) {
    %c0_i32 = arith.constant 0 : i32
    %c0_i32_0 = arith.constant 0 : i32
    return %c0_i32, %arg0 : i32, i32
  }
  func.func @transform_1(%arg0: i32) -> (i32, i32) {
    %c0_i32 = arith.constant 0 : i32
    %c0_i32_0 = arith.constant 0 : i32
    return %arg0, %c0_i32 : i32, i32
  }
  func.func @transform_2(%arg0: i32) -> (i32, i32) {
    %c0_i32 = arith.constant 0 : i32
    %c0_i32_0 = arith.constant 0 : i32
    %c0_i32_1 = arith.constant 0 : i32
    return %c0_i32, %c0_i32_0 : i32, i32
  }
  func.func @transform_3(%arg0: i32) -> (i32, i32) {
    %c0_i32 = arith.constant 0 : i32
    %c0_i32_0 = arith.constant 0 : i32
    %c0_i32_1 = arith.constant 0 : i32
    return %c0_i32, %c0_i32_0 : i32, i32
  }
  func.func @transform_4(%arg0: i32) -> (i32, i32) {
    %c0_i32 = arith.constant 0 : i32
    %c0_i32_0 = arith.constant 0 : i32
    %c0_i32_1 = arith.constant 0 : i32
    return %c0_i32, %c0_i32_0 : i32, i32
  }
}

</mosaic_0001>

<bundles_post_ra>
// kernel: tpu_custom_call.1
= control target key start
LH: loop header
LB: loop body
LE: loop exit
PB: predicated region body
PF: predicated region fallthrough
CT: control target
= control target key end

     0   :  { %9 = vsyncpa [#allocation4], 0  ;;  %s516_s0 = inlined_call_operand.vmem [shape: f32[8,128], index: 0, kind: input, shape index: {}]   ;;  %s517_s1 = inlined_call_operand.hbm [shape: f32[128,128], index: 1, kind: input, shape index: {}]   ;;  %s518_s2 = inlined_call_operand.vmem [shape: f32[8,1], index: 2, kind: input, shape index: {}]   ;;  %s519_s3 = inlined_call_operand.hbm [shape: f32[128,128], index: 3, kind: input, shape index: {}]   ;;  %s520_s4 = inlined_call_operand.hbm [shape: f32[8,128], index: 4, kind: output, shape index: {}]  }
   0x1   :  { %10 = vsyncpa [#allocation7], 0 }
   0x2   :  { %11 = vsyncpa [#allocation5], 0  ;;  %s434_s15 = smov [#allocation3]  }
   0x3   :  { %s19_s16 = sshll.u32 %s434_s15, 4  ;;  %s20_s16 = int_to_ptr.vmem [resolvable:$true] %s19_s16 }
   0x4   :  { %s376_s17 = scalar_lea.vmem %s20_s16, 2048  ;;  %p381_p1 = scmp.lt.s32.totalorder %s20_s16, %s20_s16 }
   0x5   :  { %p377_p0 = scmp.ne.s32.totalorder %s20_s16, %s376_s17  ;;  %p382_p2 = scmp.lt.s32.totalorder %s376_s17, %s376_s17 }
   0x7   :  { %p383_p3 = por %p382_p2, %p381_p1 }
   0x9   :  { %p384_p4 = pnand %p383_p3, %p377_p0 }
   0xb   :  { %387 = shalt.err (!%p384_p4)
}
   0xc   :  { %s435_s18 = smov 128   ;;  %s436_s19 = smov 8  }
   0xd   :  { %25 = dma.hbm_to_vmem [thread:$0]  %s517_s1, 2048, %s20_s16, [#allocation4], %s435_s18, %s435_s18, %s436_s19  }
   0xe   :  { %s437_s22 = smov [#allocation6]  }
   0xf   :  { %s33_s23 = sshll.u32 %s437_s22, 4  ;;  %s34_s23 = int_to_ptr.vmem [resolvable:$true] %s33_s23 }
  0x10   :  { %s396_s24 = scalar_lea.vmem %s34_s23, 2048  ;;  %p401_p6 = scmp.lt.s32.totalorder %s34_s23, %s34_s23 }
  0x11   :  { %p397_p5 = scmp.ne.s32.totalorder %s34_s23, %s396_s24  ;;  %p402_p7 = scmp.lt.s32.totalorder %s396_s24, %s396_s24 }
  0x13   :  { %p403_p8 = por %p402_p7, %p401_p6 }
  0x15   :  { %p404_p9 = pnand %p403_p8, %p397_p5 }
  0x17   :  { %407 = shalt.err (!%p404_p9)
}
  0x18   :  { %39 = dma.hbm_to_vmem [thread:$0]  %s519_s3, 2048, %s34_s23, [#allocation7], %s435_s18, %s435_s18, %s436_s19  }
  0x19   :  { %428 = dma.done.wait [#allocation4], 2048  }
  0x1a   :  { %429 = vsyncadd [#allocation4], 4294965248 }
  0x1b   :  { %430 = dma.done.wait [#allocation7], 2048  }
  0x1c   :  { %431 = vsyncadd [#allocation7], 4294965248  ;;  %v438_v0 = vmov 0.0   ;;  %vm439_vm0 = vmmov 0   ;;  %v440_v1 = vmov 0   ;;  %v68_v2 = vld [vmem:[#allocation3 + $0x78] sm:$0xff] }
  0x1d   :  { %289 = vmatprep.subr.mxu0 %v438_v0  ;;  %321 = vmatprep.mubr.msk.f32.mxu0 %vm439_vm0, %v438_v0  ;;  %v67_v3 = vld [vmem:[#allocation3 + $0x70] sm:$0xff]  ;;  %v66_v4 = vld [vmem:[#allocation3 + $0x68] sm:$0xff]  ;;  %v65_v5 = vld [vmem:[#allocation3 + $0x60] sm:$0xff] }
  0x1e   :  { %367 = vset.pattern.permute.xlu0 %v440_v1  ;;  %324 = vmatprep.subr.mxu1 %v438_v0  ;;  %v145_v6 = vld [vmem:[%s518_s2] sm:$0xff]  ;;  %v64_v7 = vld [vmem:[#allocation3 + $0x58] sm:$0xff]  ;;  %v166_v9 = vld [vmem:[#allocation6 + $0x70] sm:$0xff] }
  0x1f   :  { %356 = vmatprep.mubr.msk.f32.mxu1 %vm439_vm0, %v438_v0  ;;  %290 = vmatpush3.msra.mxu0 %v68_v2  ;;  %v167_v8 = vld [vmem:[#allocation6 + $0x78] sm:$0xff]  ;;  %v63_v10 = vld [vmem:[#allocation3 + $0x50] sm:$0xff]  ;;  %v165_v11 = vld [vmem:[#allocation6 + $0x68] sm:$0xff] }
  0x20   :  { %291 = vmatprep.subr.mxu0 %v438_v0  ;;  %148 = vperm.xlu0 %367, %v145_v6   ;;  %v62_v12 = vld [vmem:[#allocation3 + $0x48] sm:$0xff]  ;;  %v164_v13 = vld [vmem:[#allocation6 + $0x60] sm:$0xff]  ;;  %v163_v15 = vld [vmem:[#allocation6 + $0x58] sm:$0xff] }
  0x21   :  { %292 = vmatpush3.msra.mxu0 %v67_v3  ;;  %325 = vmatpush3.msra.mxu1 %v167_v8  ;;  %v61_v14 = vld [vmem:[#allocation3 + $0x40] sm:$0xff]  ;;  %v60_v16 = vld [vmem:[#allocation3 + $0x38] sm:$0xff]  ;;  %v162_v17 = vld [vmem:[#allocation6 + $0x50] sm:$0xff] }
  0x22   :  { %293 = vmatprep.subr.mxu0 %v438_v0  ;;  %326 = vmatprep.subr.mxu1 %v438_v0  ;;  %v59_v18 = vld [vmem:[#allocation3 + $0x30] sm:$0xff]  ;;  %v161_v19 = vld [vmem:[#allocation6 + $0x48] sm:$0xff]  ;;  %v160_v21 = vld [vmem:[#allocation6 + $0x40] sm:$0xff] }
  0x23   :  { %294 = vmatpush3.msra.mxu0 %v66_v4  ;;  %327 = vmatpush3.msra.mxu1 %v166_v9  ;;  %v58_v20 = vld [vmem:[#allocation3 + $0x28] sm:$0xff]  ;;  %v57_v22 = vld [vmem:[#allocation3 + $0x20] sm:$0xff]  ;;  %v159_v23 = vld [vmem:[#allocation6 + $0x38] sm:$0xff] }
  0x24   :  { %295 = vmatprep.subr.mxu0 %v438_v0  ;;  %328 = vmatprep.subr.mxu1 %v438_v0  ;;  %v56_v24 = vld [vmem:[#allocation3 + $0x18] sm:$0xff]  ;;  %v158_v25 = vld [vmem:[#allocation6 + $0x30] sm:$0xff]  ;;  %v157_v27 = vld [vmem:[#allocation6 + $0x28] sm:$0xff] }
  0x25   :  { %296 = vmatpush3.msra.mxu0 %v65_v5  ;;  %329 = vmatpush3.msra.mxu1 %v165_v11  ;;  %v55_v26 = vld [vmem:[#allocation3 + $0x10] sm:$0xff]  ;;  %v54_v28 = vld [vmem:[#allocation3 + $0x8] sm:$0xff]  ;;  %v156_v29 = vld [vmem:[#allocation6 + $0x20] sm:$0xff] }
  0x26   :  { %297 = vmatprep.subr.mxu0 %v438_v0  ;;  %330 = vmatprep.subr.mxu1 %v438_v0  ;;  %v53_v30 = vld [vmem:[#allocation3] sm:$0xff]  ;;  %v155_v31 = vld [vmem:[#allocation6 + $0x18] sm:$0xff]  ;;  %v154_v33 = vld [vmem:[#allocation6 + $0x10] sm:$0xff] }
  0x27   :  { %298 = vmatpush3.msra.mxu0 %v64_v7  ;;  %331 = vmatpush3.msra.mxu1 %v164_v13  ;;  %v52_v32 = vld [vmem:[%s516_s0] sm:$0xff]  ;;  %v153_v34 = vld [vmem:[#allocation6 + $0x8] sm:$0xff]  ;;  %s441_s0 = smov [#allocation8]  }
  0x28   :  { %299 = vmatprep.subr.mxu0 %v438_v0  ;;  %332 = vmatprep.subr.mxu1 %v438_v0  ;;  %v152_v35 = vld [vmem:[#allocation6] sm:$0xff]  ;;  %s245_s28 = sshll.u32 %s441_s0, 4  ;;  %s246_s28 = int_to_ptr.vmem [resolvable:$true] %s245_s28 }
  0x29   :  { %300 = vmatpush3.msra.mxu0 %v63_v10  ;;  %333 = vmatpush3.msra.mxu1 %v163_v15  ;;  %s408_s29 = scalar_lea.vmem %s246_s28, 128  ;;  %p413_p11 = scmp.lt.s32.totalorder %s246_s28, %s246_s28 }
  0x2a   :  { %301 = vmatprep.subr.mxu0 %v438_v0  ;;  %334 = vmatprep.subr.mxu1 %v438_v0  ;;  %p409_p10 = scmp.ne.s32.totalorder %s246_s28, %s408_s29  ;;  %p414_p12 = scmp.lt.s32.totalorder %s408_s29, %s408_s29 }
  0x2b   :  { %302 = vmatpush3.msra.mxu0 %v62_v12  ;;  %335 = vmatpush3.msra.mxu1 %v162_v17 }
  0x2c   :  { %303 = vmatprep.subr.mxu0 %v438_v0  ;;  %336 = vmatprep.subr.mxu1 %v438_v0  ;;  %p415_p13 = por %p414_p12, %p413_p11 }
  0x2d   :  { %304 = vmatpush3.msra.mxu0 %v61_v14  ;;  %337 = vmatpush3.msra.mxu1 %v161_v19 }
  0x2e   :  { %305 = vmatprep.subr.mxu0 %v438_v0  ;;  %338 = vmatprep.subr.mxu1 %v438_v0  ;;  %p416_p0 = pnand %p415_p13, %p409_p10 }
  0x2f   :  { %306 = vmatpush3.msra.mxu0 %v60_v16  ;;  %339 = vmatpush3.msra.mxu1 %v160_v21 }
  0x30   :  { %307 = vmatprep.subr.mxu0 %v438_v0  ;;  %340 = vmatprep.subr.mxu1 %v438_v0 }
  0x31   :  { %308 = vmatpush3.msra.mxu0 %v59_v18  ;;  %341 = vmatpush3.msra.mxu1 %v159_v23 }
  0x32   :  { %309 = vmatprep.subr.mxu0 %v438_v0  ;;  %342 = vmatprep.subr.mxu1 %v438_v0 }
  0x33   :  { %310 = vmatpush3.msra.mxu0 %v58_v20  ;;  %343 = vmatpush3.msra.mxu1 %v158_v25 }
  0x34   :  { %311 = vmatprep.subr.mxu0 %v438_v0  ;;  %344 = vmatprep.subr.mxu1 %v438_v0 }
  0x35   :  { %312 = vmatpush3.msra.mxu0 %v57_v22  ;;  %345 = vmatpush3.msra.mxu1 %v157_v27 }
  0x36   :  { %313 = vmatprep.subr.mxu0 %v438_v0  ;;  %346 = vmatprep.subr.mxu1 %v438_v0 }
  0x37   :  { %314 = vmatpush3.msra.mxu0 %v56_v24  ;;  %347 = vmatpush3.msra.mxu1 %v156_v29 }
  0x38   :  { %315 = vmatprep.subr.mxu0 %v438_v0  ;;  %348 = vmatprep.subr.mxu1 %v438_v0 }
  0x39   :  { %316 = vmatpush3.msra.mxu0 %v55_v26  ;;  %349 = vmatpush3.msra.mxu1 %v155_v31 }
  0x3a   :  { %317 = vmatprep.subr.mxu0 %v438_v0  ;;  %350 = vmatprep.subr.mxu1 %v438_v0 }
  0x3b   :  { %318 = vmatpush3.msra.mxu0 %v54_v28  ;;  %351 = vmatpush3.msra.mxu1 %v154_v33 }
  0x3c   :  { %319 = vmatprep.subr.mxu0 %v438_v0  ;;  %352 = vmatprep.subr.mxu1 %v438_v0 }
  0x3d   :  { %320 = vmatpush3.msra.mxu0 %v53_v30  ;;  %353 = vmatpush3.msra.mxu1 %v153_v34 }
  0x3e   :  { %322 = vmatmul.mubr.f32.vlgmr.msra.gmra.mxu0 %v52_v32  ;;  %354 = vmatprep.subr.mxu1 %v438_v0 }
  0x3f   :  { %355 = vmatpush3.msra.mxu1 %v152_v35 }
  0x9b   :  { %v149_v36 = vpop.permute.xlu0 %148 }
  0xfe   :  { %v135_v37 = vpop.f32.mrf.mxu0 }
  0xff   :  { %v151_v38 = vmul.f32 %v149_v36, %v135_v37 }
 0x100   :  { %v323_v39 = vpop.f32.mrf.mxu0 }
 0x101   :  { %357 = vmatmul.mubr.f32.vlgmr.msra.gmra.mxu1 %v151_v38 }
 0x1c1   :  { %v234_v40 = vpop.f32.mrf.mxu1 }
 0x1c2   :  { %238 = vst [vmem:[#allocation8] sm:$0xff] %v234_v40 }
 0x1c3   :  { %v358_v41 = vpop.f32.mrf.mxu1 }
 0x1c4   :  { %419 = shalt.err (!%p416_p0)
}
 0x1c5   :  { %248 = dma.vmem_to_hbm [thread:$0]  %s246_s28, 128, %s520_s4, [#allocation5]  }
 0x1c6   :  { %432 = dma.done.wait [#allocation5], 128  }
 0x1c7   :  { %433 = vsyncadd [#allocation5], 4294967168 }
 0x1c8   :  { %252 = vsyncpa [#allocation4], 1 }
 0x1c9   :  { %253 = vsyncpa [#allocation7], 1 }
 0x1ca   :  { %254 = vsyncpa [#allocation5], 1 }

</bundles_post_ra>
